<compile_context>
chip_gen: v5e
topology: v5e:2x2
jax: 0.10.0
libtpu: 0.0.40
codegen_flags: <defaults>
</compile_context>

<pallas_src>
import functools

import jax
import jax.numpy as jnp
from jax.experimental import pallas as pl
from jax.experimental.pallas import tpu as pltpu

_LANES = 128  # lane-dense output slab width


def _joint_kernel(x_ref, w_ref, b_ref, out_ref, *, num_classes):
    """Fused mean-pool + both heads.

    x_ref:   (B, S, H) f32
    w_ref:   (H, 128)  f32  -- [w_sent | w_stance | 0-pad], 1/S scale pre-folded
    b_ref:   (1, 128)  f32  -- [b_sent | b_stance | 0-pad]
    out_ref: (B, 128)  f32  -- col 0: sigmoid sentiment, cols 1..C: stance
                               softmax, remaining cols: 0
    """
    # Mean pool: the 1/S scale is baked into w_ref, so a plain sum suffices.
    pooled = jnp.sum(x_ref[...], axis=1)                             # (B, H)

    # Single fused matmul for both heads.
    logits = jnp.dot(pooled, w_ref[...],
                     preferred_element_type=jnp.float32) + b_ref[...]  # (B, 128)

    col = jax.lax.broadcasted_iota(jnp.int32, logits.shape, dimension=1)

    # Sentiment: sigmoid via exp + reciprocal (both on the EUP slot).
    sig = pl.reciprocal(1.0 + jnp.exp(-logits), approx=False)        # (B, 128)

    # Stance: softmax restricted to columns 1..C (padding columns masked out).
    stance_mask = (col >= 1) & (col < 1 + num_classes)
    masked = jnp.where(stance_mask, logits, jnp.float32(-1e30))
    m = jnp.max(masked, axis=-1, keepdims=True)                      # (B, 1)
    e = jnp.exp(masked - m)                                          # 0 on pad cols
    denom = jnp.sum(e, axis=-1, keepdims=True)                       # (B, 1)
    stance = e * pl.reciprocal(denom, approx=False)                  # (B, 128)

    # Column 0 -> sentiment, columns 1..C -> stance probs, rest -> 0.
    out_ref[...] = jnp.where(col == 0, sig, stance)


def joint_multitask_forward(x, w_cat, b_cat, num_classes):
    """Runs the joint model for a whole batch inside one Pallas kernel.

    Returns (sentiment, stance) with shapes (B, 1) and (B, C).
    """
    B, S, H = x.shape
    assert w_cat.shape == (H, _LANES)
    assert b_cat.shape == (1, _LANES)

    out = pl.pallas_call(
        functools.partial(_joint_kernel, num_classes=num_classes),
        out_shape=jax.ShapeDtypeStruct((B, _LANES), jnp.float32),
        in_specs=[pl.BlockSpec(memory_space=pltpu.MemorySpace.VMEM)] * 3,
        out_specs=pl.BlockSpec(memory_space=pltpu.MemorySpace.VMEM),
    )(x, w_cat, b_cat)

    sentiment = out[:, 0:1]                     # (B, 1)
    stance = out[:, 1:1 + num_classes]          # (B, C)
    return sentiment, stance


class JointMultiTaskModelPallas:
    """Mirrors JointMultiTaskModel.forward (returns stacked per-task outputs)."""

    def __init__(self, hidden=32, num_stance_classes=3, seq_len=8,
                 key=jax.random.PRNGKey(42)):
        k1, k2 = jax.random.split(key, 2)
        self.hidden = hidden
        self.num_stance_classes = num_stance_classes
        self.seq_len = seq_len

        # Raw head parameters (kept for reference checks / parity with
        # self.sentiment.w in the PyTorch module).
        self.w_sent = (jax.random.normal(k1, (hidden, 1), jnp.float32)
                       / jnp.sqrt(hidden))
        self.b_sent = jnp.zeros((1, 1), jnp.float32)
        self.w_stance = (jax.random.normal(k2, (hidden, num_stance_classes),
                                           jnp.float32) / jnp.sqrt(hidden))
        self.b_stance = jnp.zeros((1, num_stance_classes), jnp.float32)

        # One-time parameter transform: fuse heads, fold 1/S mean scale into the
        # weights, and zero-pad to a lane-dense 128-wide slab.
        w_cat = jnp.concatenate([self.w_sent, self.w_stance], axis=1)   # (H, 1+C)
        w_cat = w_cat * (1.0 / float(seq_len))                          # fold mean
        b_cat = jnp.concatenate([self.b_sent, self.b_stance], axis=1)   # (1, 1+C)

        self.w_cat = jnp.zeros((hidden, _LANES), jnp.float32).at[
            :, :1 + num_stance_classes].set(w_cat)
        self.b_cat = jnp.zeros((1, _LANES), jnp.float32).at[
            :, :1 + num_stance_classes].set(b_cat)

    def __call__(self, x):
        # Returns stacked (B, 1) sentiment and (B, C) stance arrays; callers that
        # want the original per-sentence tuple list can index these directly.
        assert x.shape[1] == self.seq_len, "1/S scale was folded for this seq_len"
        return joint_multitask_forward(x, self.w_cat, self.b_cat,
                                       self.num_stance_classes)


if __name__ == "__main__":
    B, S, H, C = 2, 8, 32, 3
    key = jax.random.PRNGKey(0)
    x = jax.random.normal(key, (B, S, H), jnp.float32)

    model = JointMultiTaskModelPallas(hidden=H, num_stance_classes=C, seq_len=S)
    sent, stance = model(x)
    jax.block_until_ready(sent)
    jax.block_until_ready(stance)

    # Shape sanity.
    assert sent.shape == (B, 1) and stance.shape == (B, C)

    # Sentiment in (0,1); stance rows sum to 1.
    assert bool(jnp.all((sent > 0.0) & (sent < 1.0)))
    assert bool(jnp.all(jnp.abs(jnp.sum(stance, axis=-1) - 1.0) < 1e-5))

    # Pure-JAX reference check of the fused kernel.
    pooled = jnp.mean(x, axis=1)
    ref_sent = 1.0 / (1.0 + jnp.exp(-(pooled @ model.w_sent + model.b_sent)))
    ref_logit = pooled @ model.w_stance + model.b_stance
    ref_stance = jax.nn.softmax(ref_logit, axis=-1)
    assert bool(jnp.allclose(sent, ref_sent, atol=1e-5))
    assert bool(jnp.allclose(stance, ref_stance, atol=1e-5))

    print("KERNEL_OK")
</pallas_src>

<mosaic_0001>
module attributes {stable_mosaic.version = 11 : i64} {
  func.func @_joint_kernel(%arg0: memref<2x8x32xf32, #tpu.memory_space<vmem>>, %arg1: memref<32x128xf32, #tpu.memory_space<vmem>>, %arg2: memref<1x128xf32, #tpu.memory_space<vmem>>, %arg3: memref<2x128xf32, #tpu.memory_space<vmem>>) attributes {dimension_semantics = [], scalar_prefetch = 0 : i64, scratch_operands = 0 : i64, tpu.core_type = #tpu.core_type<tc>} {
    %c0 = arith.constant 0 : index
    %c0_0 = arith.constant 0 : index
    %c0_1 = arith.constant 0 : index
    %0 = vector.load %arg0[%c0, %c0_0, %c0_1] : memref<2x8x32xf32, #tpu.memory_space<vmem>>, vector<2x8x32xf32>
    %cst = arith.constant dense<0.000000e+00> : vector<2x32xf32>
    %1 = vector.multi_reduction <add>, %0, %cst [1] : vector<2x8x32xf32> to vector<2x32xf32>
    %c0_2 = arith.constant 0 : index
    %c0_3 = arith.constant 0 : index
    %2 = vector.load %arg1[%c0_2, %c0_3] : memref<32x128xf32, #tpu.memory_space<vmem>>, vector<32x128xf32>
    %cst_4 = arith.constant dense<0.000000e+00> : vector<2x128xf32>
    %3 = tpu.matmul %1, %2, %cst_4 {dimension_numbers = #tpu.dot_dimension_numbers<[1], [0], [0], [1], [0, 0, 1, 1], [], []>} : vector<2x32xf32>, vector<32x128xf32>, vector<2x128xf32> -> vector<2x128xf32>
    %c0_5 = arith.constant 0 : index
    %c0_6 = arith.constant 0 : index
    %4 = vector.load %arg2[%c0_5, %c0_6] : memref<1x128xf32, #tpu.memory_space<vmem>>, vector<1x128xf32>
    %5 = vector.broadcast %4 : vector<1x128xf32> to vector<2x128xf32>
    %6 = arith.addf %3, %5 : vector<2x128xf32>
    %7 = tpu.iota {dimensions = array<i32: 1>} : vector<2x128xi32>
    %cst_7 = arith.constant 0.000000e+00 : f32
    %8 = vector.broadcast %cst_7 : f32 to vector<2x128xf32>
    %9 = arith.subf %8, %6 : vector<2x128xf32>
    %10 = math.exp %9 : vector<2x128xf32>
    %cst_8 = arith.constant 1.000000e+00 : f32
    %11 = vector.broadcast %cst_8 : f32 to vector<2x128xf32>
    %12 = arith.addf %11, %10 : vector<2x128xf32>
    %13 = tpu.reciprocal %12 : vector<2x128xf32> -> vector<2x128xf32>
    %c1_i32 = arith.constant 1 : i32
    %14 = vector.broadcast %c1_i32 : i32 to vector<2x128xi32>
    %15 = arith.cmpi sge, %7, %14 : vector<2x128xi32>
    %c4_i32 = arith.constant 4 : i32
    %16 = vector.broadcast %c4_i32 : i32 to vector<2x128xi32>
    %17 = arith.cmpi slt, %7, %16 : vector<2x128xi32>
    %18 = arith.andi %15, %17 : vector<2x128xi1>
    %cst_9 = arith.constant -1.000000e+30 : f32
    %19 = vector.broadcast %cst_9 : f32 to vector<2x128xf32>
    %20 = arith.select %18, %6, %19 : vector<2x128xi1>, vector<2x128xf32>
    %cst_10 = arith.constant dense<0xFF800000> : vector<2xf32>
    %21 = vector.multi_reduction <maximumf>, %20, %cst_10 [1] : vector<2x128xf32> to vector<2xf32>
    %22 = vector.shape_cast %21 : vector<2xf32> to vector<2x1xf32>
    %23 = vector.broadcast %22 : vector<2x1xf32> to vector<2x128xf32>
    %24 = arith.subf %20, %23 : vector<2x128xf32>
    %25 = math.exp %24 : vector<2x128xf32>
    %cst_11 = arith.constant dense<0.000000e+00> : vector<2xf32>
    %26 = vector.multi_reduction <add>, %25, %cst_11 [1] : vector<2x128xf32> to vector<2xf32>
    %27 = vector.shape_cast %26 : vector<2xf32> to vector<2x1xf32>
    %28 = tpu.reciprocal %27 : vector<2x1xf32> -> vector<2x1xf32>
    %29 = vector.broadcast %28 : vector<2x1xf32> to vector<2x128xf32>
    %30 = arith.mulf %25, %29 : vector<2x128xf32>
    %c0_i32 = arith.constant 0 : i32
    %31 = vector.broadcast %c0_i32 : i32 to vector<2x128xi32>
    %32 = arith.cmpi eq, %7, %31 : vector<2x128xi32>
    %33 = arith.select %32, %13, %30 : vector<2x128xi1>, vector<2x128xf32>
    %c0_12 = arith.constant 0 : index
    %c0_13 = arith.constant 0 : index
    %34 = vector.load %arg3[%c0_12, %c0_13] : memref<2x128xf32, #tpu.memory_space<vmem>>, vector<2x128xf32>
    tpu.vector_store %arg3[%c0_12, %c0_13], %33 {strides = array<i32>} : memref<2x128xf32, #tpu.memory_space<vmem>>, vector<2x128xf32>,
    return
  }
}

</mosaic_0001>

<bundles_post_ra>
// kernel: tpu_custom_call.1
= control target key start
LH: loop header
LB: loop body
LE: loop exit
PB: predicated region body
PF: predicated region fallthrough
CT: control target
= control target key end

     0   :  { %8 = vsyncpa [#allocation3], 0  ;;  %s312_s0 = inlined_call_operand.hbm [shape: f32[2,8,32], index: 0, kind: input, shape index: {}]   ;;  %s313_s1 = inlined_call_operand.hbm [shape: f32[32,128], index: 1, kind: input, shape index: {}]   ;;  %s314_s2 = inlined_call_operand.vmem [shape: f32[1,128], index: 2, kind: input, shape index: {}]   ;;  %s315_s3 = inlined_call_operand.hbm [shape: f32[2,128], index: 3, kind: output, shape index: {}]  }
   0x1   :  { %9 = vsyncpa [#allocation6], 0 }
   0x2   :  { %10 = vsyncpa [#allocation4], 0  ;;  %s15_s14 = sshll.u32 %s312_s0, 4  ;;  %s261_s15 = smov [#allocation2]   ;;  %s16_s14 = int_to_ptr.hbm [resolvable:$true] %s15_s14 }
   0x3   :  { %s17_s16 = sshll.u32 %s261_s15, 4  ;;  %s28_s19 = sshll.u32 %s313_s1, 4  ;;  %s18_s16 = int_to_ptr.vmem [resolvable:$true] %s17_s16  ;;  %s29_s19 = int_to_ptr.hbm [resolvable:$true] %s28_s19 }
   0x4   :  { %s262_s20 = smov 128   ;;  %s263_s21 = smov 8  }
   0x5   :  { %23 = dma.hbm_to_vmem [thread:$0]  %s16_s14, 256, %s18_s16, [#allocation3], %s262_s20, %s262_s20, %s263_s21  }
   0x6   :  { %s264_s22 = smov [#allocation5]  }
   0x7   :  { %s30_s23 = sshll.u32 %s264_s22, 4  ;;  %s31_s23 = int_to_ptr.vmem [resolvable:$true] %s30_s23 }
   0x8   :  { %36 = dma.hbm_to_vmem [thread:$0]  %s29_s19, 512, %s31_s23, [#allocation6], %s262_s20, %s262_s20, %s263_s21  }
   0x9   :  { %255 = dma.done.wait [#allocation3], 256  }
   0xa   :  { %256 = vsyncadd [#allocation3], 4294967040 }
   0xb   :  { %257 = dma.done.wait [#allocation6], 512  }
   0xc   :  { %258 = vsyncadd [#allocation6], 4294966784  ;;  %vm49_vm0 = vcmask 261120   ;;  %v67_v0 = vld [vmem:[#allocation5 + $0x18] sm:$0xff]  ;;  %v66_v1 = vld [vmem:[#allocation5 + $0x10] sm:$0xff]  ;;  %vm74_vm1 = vcmask 1041409   ;;  %v98_v21 = vlaneseq }
   0xd   :  { %90 = vmatpush.msra.mxu0 %v67_v0  ;;  %v47_v2 = vld [vmem:[#allocation2] sm:$0xff]  ;;  %v48_v3 = vld [vmem:[#allocation2 + $0x8] sm:$0xff]  ;;  %v65_v4 = vld [vmem:[#allocation5 + $0x8] sm:$0xff]  ;;  %vm122_vm5 = vcmask 1041408   ;;  %s157_s27 = sshll.u32 %s315_s3, 4  ;;  %s158_s27 = int_to_ptr.hbm [resolvable:$true] %s157_s27 }
   0xe   :  { %v50_v5 = vsel %vm49_vm0, %v47_v2, 0.0  ;;  %v57_v6 = vsel %vm49_vm0, %v48_v3, 0.0  ;;  %v64_v9 = vld [vmem:[#allocation5] sm:$0xff]  ;;  %v295_v22 = vand.u32 127, %v98_v21  ;;  %v174_v23 = vld [vmem:[%s314_s2] ss:$0 sm:$0xff] }
   0xf   :  { %91 = vmatpush.msra.mxu0 %v66_v1  ;;  %v51_v7 = vrot.slane %v50_v5, 4  ;;  %v58_v8 = vrot.slane %v57_v6, 4  ;;  %s265_s2 = smov [#allocation7]  }
  0x10   :  { %vm118_vm2 = vcmp.ge.s32.totalorder %v295_v22, 1  ;;  %vm119_vm3 = vcmp.lt.s32.totalorder %v295_v22, 4  ;;  %s155_s24 = sshll.u32 %s265_s2, 4  ;;  %vm147_vm13 = vcmp.eq.s32.totalorder %v295_v22, 0  ;;  %s156_s24 = int_to_ptr.vmem [resolvable:$true] %s155_s24 }
  0x11   :  { %92 = vmatpush.msra.mxu0 %v65_v4  ;;  %v52_v10 = vadd.f32 %v51_v7, %v50_v5  ;;  %v59_v11 = vadd.f32 %v58_v8, %v57_v6  ;;  %vm120_vm4 = vmand %vm118_vm2, %vm119_vm3 }
  0x13   :  { %93 = vmatpush.msra.mxu0 %v64_v9  ;;  %v53_v12 = vrot.slane %v52_v10, 2  ;;  %v60_v13 = vrot.slane %v59_v11, 2 }
  0x15   :  { %v54_v14 = vadd.f32 %v53_v12, %v52_v10  ;;  %v61_v15 = vadd.f32 %v60_v13, %v59_v11 }
  0x17   :  { %v55_v16 = vrot.slane %v54_v14, 1  ;;  %v62_v17 = vrot.slane %v61_v15, 1 }
  0x19   :  { %v56_v18 = vadd.f32 %v55_v16, %v54_v14  ;;  %v63_v19 = vadd.f32 %v62_v17, %v61_v15 }
  0x1b   :  { %v75_v20 = vsel %vm74_vm1, %v63_v19, %v56_v18 }
  0x1c   :  { %168 = vmatmul.msk.f32.vlgmr.msra.gmra.mxu0 %vm49_vm0, %v75_v20 }
  0x99   :  { %v95_v24 = vpop.f32.mrf.mxu0 }
  0x9a   :  { %v96_v25 = vadd.f32 %v174_v23, %v95_v24 }
  0x9c   :  { %v121_v26 = vsel %vm120_vm4, %v96_v25, -1e+30  ;;  %v100_v33 = vsub.f32 0.0, %v96_v25 }
  0x9d   :  { %v123_v27 = vsel %vm122_vm5, %v121_v26, -inf }
  0x9e   :  { %124 = vmax.xlane.f32.xlu0 %v123_v27  ;;  %v101_v34 = vmul.f32 1.442695, %v100_v33 }
 0x111   :  { %v125_v28 = vpop.xlane.xlu0 %124 }
 0x112   :  { %v126_v29 = vsub.f32 %v121_v26, %v125_v28 }
 0x114   :  { %v127_v30 = vmul.f32 1.442695, %v126_v29 }
 0x116   :  { %175 = vpow2.f32 %v127_v30 }
 0x117   :  { %177 = vpow2.f32 %v101_v34 }
 0x11c   :  { %v176_v31 = vpop.eup %175 }
 0x11d   :  { %v129_v32 = vsel %vm122_vm5, %v176_v31, 0.0  ;;  %v178_v35 = vpop.eup %177 }
 0x11e   :  { %130 = vadd.xlane.f32.xlu0 %v129_v32  ;;  %v103_v36 = vadd.f32 1.0, %v178_v35 }
 0x120   :  { %179 = vrcp.f32 %v103_v36  ;;  %vm109_vm8 = vweird.f32 %v103_v36  ;;  %v115_v49 = vand.u32 2147483648, %v103_v36  ;;  %v113_v52 = vand.u32 2147483647, %v103_v36 }
 0x122   :  { %v116_v57 = vor.u32 1.1754944e-38, %v115_v49  ;;  %vm114_vm14 = vcmp.eq.f32.partialorder %v113_v52, 8.507059e+37 }
 0x126   :  { %v180_v37 = vpop.eup %179 }
 0x127   :  { %v105_v38 = vmul.f32 %v180_v37, %v103_v36  ;;  %vm110_vm6 = vweird.f32 %v180_v37 }
 0x128   :  { %vm302_vm10 = vmor %vm109_vm8, %vm110_vm6 }
 0x129   :  { %v106_v40 = vsub.f32 1.0, %v105_v38 }
 0x12b   :  { %v107_v43 = vmul.f32 %v180_v37, %v106_v40 }
 0x12d   :  { %v108_v48 = vadd.f32 %v180_v37, %v107_v43 }
 0x12f   :  { %v112_v55 = vsel %vm302_vm10, %v180_v37, %v108_v48 }
 0x130   :  { %v117_v59 = vsel %vm114_vm14, %v116_v57, %v112_v55 }
 0x191   :  { %v131_v39 = vpop.xlane.xlu0 %130 }
 0x192   :  { %181 = vrcp.f32 %v131_v39  ;;  %v143_v45 = vand.u32 2147483648, %v131_v39  ;;  %v141_v47 = vand.u32 2147483647, %v131_v39  ;;  %vm137_vm9 = vweird.f32 %v131_v39 }
 0x194   :  { %v144_v53 = vor.u32 1.1754944e-38, %v143_v45  ;;  %vm142_vm12 = vcmp.eq.f32.partialorder %v141_v47, 8.507059e+37 }
 0x198   :  { %v182_v41 = vpop.eup %181 }
 0x199   :  { %v133_v42 = vmul.f32 %v182_v41, %v131_v39  ;;  %vm138_vm7 = vweird.f32 %v182_v41 }
 0x19a   :  { %vm139_vm11 = vmor %vm137_vm9, %vm138_vm7 }
 0x19b   :  { %v134_v44 = vsub.f32 1.0, %v133_v42 }
 0x19d   :  { %v135_v46 = vmul.f32 %v182_v41, %v134_v44 }
 0x19f   :  { %v136_v50 = vadd.f32 %v182_v41, %v135_v46 }
 0x1a1   :  { %v140_v54 = vsel %vm139_vm11, %v182_v41, %v136_v50 }
 0x1a2   :  { %v145_v56 = vsel %vm142_vm12, %v144_v53, %v140_v54 }
 0x1a3   :  { %v146_v58 = vmul.f32 %v176_v31, %v145_v56 }
 0x1a5   :  { %v148_v60 = vsel %vm147_vm13, %v117_v59, %v146_v58 }
 0x1a6   :  { %149 = vst [vmem:[#allocation7] sm:$0x3] %v148_v60 }
 0x1a7   :  { %160 = dma.vmem_to_hbm [thread:$0]  %s156_s24, 32, %s158_s27, [#allocation4]  }
 0x1a8   :  { %259 = dma.done.wait [#allocation4], 32  }
 0x1a9   :  { %260 = vsyncadd [#allocation4], 4294967264 }
 0x1aa   :  { %165 = vsyncpa [#allocation3], 1 }
 0x1ab   :  { %166 = vsyncpa [#allocation6], 1 }
 0x1ac   :  { %167 = vsyncpa [#allocation4], 1 }

</bundles_post_ra>
